<compile_context>
chip_gen: v5e
topology: v5e:2x2
jax: 0.10.0
libtpu: 0.0.40
codegen_flags: <defaults>
</compile_context>

<pallas_src>
import functools

import jax
import jax.numpy as jnp
from jax.experimental import pallas as pl
from jax.experimental.pallas import tpu as pltpu

_PAD_LOGIT = 1e9  # class-0 pad logit => p_t == 1 exactly => zero loss


def _round_up(x, m):
    return ((x + m - 1) // m) * m


def _focal_loss_kernel(preds_ref, labels_ref, out_ref, *, alpha_vals, gamma):
    """One grid step: (C, tile_rows, 128) logits -> (1, 128) partial sum."""
    num_classes = len(alpha_vals)
    labels = labels_ref[...].astype(jnp.int32)            # (tile_rows, 128)

    # Per-class logit planes, each (tile_rows, 128); cast to f32 in-register.
    rows = [preds_ref[k].astype(jnp.float32) for k in range(num_classes)]

    # Stable log-sum-exp over the static class planes (pure elementwise VPU
    # ops + one exp per class on the EUP).
    m = rows[0]
    for k in range(1, num_classes):
        m = jnp.maximum(m, rows[k])
    exps = [jnp.exp(r - m) for r in rows]
    sumexp = exps[0]
    for k in range(1, num_classes):
        sumexp = sumexp + exps[k]

    # "gather(1, labels)" expressed as per-class selects; alpha values are
    # baked-in scalar constants so no alpha tensor is streamed from HBM.
    z_t = rows[0]
    e_t = exps[0]
    alpha_t = jnp.full_like(m, jnp.float32(alpha_vals[0]))
    for k in range(1, num_classes):
        sel = labels == k
        z_t = jnp.where(sel, rows[k], z_t)
        e_t = jnp.where(sel, exps[k], e_t)
        alpha_t = jnp.where(sel, jnp.float32(alpha_vals[k]), alpha_t)

    logp_t = (z_t - m) - jnp.log(sumexp)                  # log p_t
    p_t = e_t * pl.reciprocal(sumexp)                     # reuse exp: no 2nd exp
    one_minus = jnp.maximum(1.0 - p_t, 0.0)               # clamp rounding ulp

    g = float(gamma)
    if g == int(g) and int(g) >= 0:                       # gamma=2 -> multiplies
        ig = int(g)
        focal = jnp.ones_like(one_minus) if ig == 0 else one_minus
        for _ in range(max(ig - 1, 0)):
            focal = focal * one_minus
    else:                                                  # non-integer gamma
        focal = jnp.power(one_minus, g)

    loss = (-alpha_t) * focal * logp_t                     # (tile_rows, 128)

    # Lane-dense partial: reduce over sublanes only; lanes summed in wrapper.
    out_ref[...] = jnp.sum(loss, axis=0, keepdims=True)    # (1, 128)


def _focal_loss_from_slabs(preds_slab, labels_slab, n_valid, *, alpha_vals,
                           gamma, tile_rows, size_average):
    """Runs the kernel on pre-built (C, R, 128) / (R, 128) slabs."""
    c, rows_padded, _ = preds_slab.shape
    num_tiles = rows_padded // tile_rows
    n_padded = rows_padded * 128

    kernel = functools.partial(_focal_loss_kernel,
                               alpha_vals=alpha_vals, gamma=float(gamma))

    bytes_accessed = (n_padded * c * preds_slab.dtype.itemsize
                      + n_padded * labels_slab.dtype.itemsize
                      + num_tiles * 128 * 4)

    partials = pl.pallas_call(
        kernel,
        out_shape=jax.ShapeDtypeStruct((num_tiles, 128), jnp.float32),
        grid=(num_tiles,),
        in_specs=[
            pl.BlockSpec((c, tile_rows, 128), lambda i: (0, i, 0)),
            pl.BlockSpec((tile_rows, 128), lambda i: (i, 0)),
        ],
        out_specs=pl.BlockSpec((1, 128), lambda i: (i, 0)),
        compiler_params=pltpu.CompilerParams(
            dimension_semantics=("parallel",),
            vmem_limit_bytes=32 * 1024 * 1024),
        cost_estimate=pl.CostEstimate(
            flops=int(n_padded) * (6 * c + 14),
            transcendentals=int(n_padded) * (c + 2),
            bytes_accessed=int(bytes_accessed)),
    )(preds_slab, labels_slab)

    total = jnp.sum(partials)                              # tiny wrapper reduce
    if size_average:
        return total / jnp.float32(n_valid)
    return total


def focal_loss_pallas(preds, labels, *, alpha=0.25, gamma=2.0, num_classes=2,
                      size_average=True, max_tile_rows=2048):
    """Mirrors focal_loss.forward(preds, labels) from the PyTorch module."""
    # Parameter setup (mirrors __init__): per-class alpha as static scalars.
    if isinstance(alpha, (list, tuple)):
        alpha_vals = tuple(float(a) for a in alpha)
    else:
        alpha_vals = (float(alpha),) + (float(1.0 - alpha),) * (num_classes - 1)

    c = preds.shape[-1]
    assert c == len(alpha_vals), "alpha / num_classes must match preds.size(-1)"

    # preds.view(-1, C); labels.view(-1).  Keep the original preds dtype
    # (cast to f32 happens in-kernel); labels shrink to int8 (1 byte/sample).
    preds2d = preds.reshape(-1, c)
    labels1d = labels.reshape(-1).astype(jnp.int8)
    n = preds2d.shape[0]

    # Row tiling: 128 samples per lane row; rows per tile a multiple of 32
    # (int8 labels' native sublane tile).  Guarantee >= 2 tiles whenever the
    # input exceeds one tile so the parallel grid uses both v7x TensorCores.
    rows = max(1, -(-n // 128))
    max_tile_rows = max(32, _round_up(int(max_tile_rows), 32))
    if rows <= 32:
        tile_rows = 32
    else:
        tile_rows = min(max_tile_rows, _round_up(-(-rows // 2), 32))
    rows_padded = _round_up(rows, tile_rows)
    n_padded = rows_padded * 128
    pad = n_padded - n

    # Lane-dense slab layout: classes on the leading axis, samples dense on
    # (row, lane).  Padded samples get class-0 logit = +_PAD_LOGIT and label 0
    # so their loss is exactly zero (no in-kernel remainder mask needed).
    # NOTE: producers that can emit this layout directly should call
    # _focal_loss_from_slabs and skip this extra re-layout pass over HBM.
    preds_t = preds2d.T                                     # (C, N)
    if pad:
        big = jnp.asarray(_PAD_LOGIT, dtype=preds_t.dtype)
        pad_block = jnp.zeros((c, pad), dtype=preds_t.dtype).at[0, :].set(big)
        preds_t = jnp.concatenate([preds_t, pad_block], axis=1)
        labels1d = jnp.concatenate(
            [labels1d, jnp.zeros((pad,), dtype=jnp.int8)])
    preds_slab = preds_t.reshape(c, rows_padded, 128)
    labels_slab = labels1d.reshape(rows_padded, 128)

    return _focal_loss_from_slabs(preds_slab, labels_slab, n,
                                  alpha_vals=alpha_vals, gamma=gamma,
                                  tile_rows=tile_rows,
                                  size_average=size_average)


def _focal_loss_ref(preds, labels, *, alpha=0.25, gamma=2.0, num_classes=2,
                    size_average=True):
    """Pure-JAX reference replicating the PyTorch forward for validation."""
    if isinstance(alpha, (list, tuple)):
        alpha_vec = jnp.asarray(alpha, dtype=jnp.float32)
    else:
        alpha_vec = jnp.concatenate([
            jnp.full((1,), alpha, dtype=jnp.float32),
            jnp.full((num_classes - 1,), 1.0 - alpha, dtype=jnp.float32),
        ])
    c = preds.shape[-1]
    p = preds.reshape(-1, c).astype(jnp.float32)
    lbl = labels.reshape(-1)
    logsoft = jax.nn.log_softmax(p, axis=1)
    soft = jnp.exp(logsoft)
    logp_t = jnp.take_along_axis(logsoft, lbl[:, None], axis=1)[:, 0]
    p_t = jnp.take_along_axis(soft, lbl[:, None], axis=1)[:, 0]
    a_t = alpha_vec[lbl]
    loss = -a_t * (1.0 - p_t) ** gamma * logp_t
    return jnp.mean(loss) if size_average else jnp.sum(loss)


if __name__ == "__main__":
    key = jax.random.PRNGKey(0)
    k1, k2, k3, k4 = jax.random.split(key, 4)

    # Case 1: small shapes consistent with the module (batch=8, num_classes=2).
    N, C = 8, 2
    preds = jax.random.normal(k1, (N, C), dtype=jnp.float32)
    labels = jax.random.randint(k2, (N,), 0, C, dtype=jnp.int32)

    loss = jax.block_until_ready(
        focal_loss_pallas(preds, labels, alpha=0.25, gamma=2.0,
                          num_classes=C, size_average=True))
    ref = _focal_loss_ref(preds, labels, alpha=0.25, gamma=2.0,
                          num_classes=C, size_average=True)
    assert jnp.allclose(loss, ref, atol=1e-5, rtol=1e-5), (loss, ref)

    # Case 2: multi-tile parallel grid; N=5000 exercises zero-loss padding,
    # N=8192 exercises the no-padding path; both reduction modes.
    for n2 in (5000, 8192):
        preds2 = jax.random.normal(k3, (n2, C), dtype=jnp.float32)
        labels2 = jax.random.randint(k4, (n2,), 0, C, dtype=jnp.int32)
        for size_average in (True, False):
            got = jax.block_until_ready(
                focal_loss_pallas(preds2, labels2, alpha=0.25, gamma=2.0,
                                  num_classes=C, size_average=size_average,
                                  max_tile_rows=32))
            want = _focal_loss_ref(preds2, labels2, alpha=0.25, gamma=2.0,
                                   num_classes=C, size_average=size_average)
            assert jnp.allclose(got, want, atol=1e-4, rtol=3e-4), (
                n2, size_average, got, want)

    print("KERNEL_OK")
</pallas_src>

<mosaic_0001>
module attributes {stable_mosaic.version = 11 : i64} {
  func.func @_focal_loss_kernel(%arg0: i32, %arg1: memref<2x32x128xf32, #tpu.memory_space<vmem>>, %arg2: memref<32x128xi8, #tpu.memory_space<vmem>>, %arg3: memref<1x128xf32, #tpu.memory_space<vmem>>) attributes {dimension_semantics = [#tpu.dimension_semantics<parallel>], iteration_bounds = array<i64: 1>, scalar_prefetch = 0 : i64, scratch_operands = 0 : i64, tpu.core_type = #tpu.core_type<tc>, window_params = [{transform_indices = @transform_0, window_bounds = array<i64: 2, 32, 128>}, {transform_indices = @transform_1, window_bounds = array<i64: 32, 128>}, {transform_indices = @transform_2, window_bounds = array<i64: 1, 128>}]} {
    %c0 = arith.constant 0 : index
    %c0_0 = arith.constant 0 : index
    %0 = vector.load %arg2[%c0, %c0_0] : memref<32x128xi8, #tpu.memory_space<vmem>>, vector<32x128xi8>
    %1 = arith.extsi %0 : vector<32x128xi8> to vector<32x128xi32>
    %c0_1 = arith.constant 0 : index
    %c0_2 = arith.constant 0 : index
    %c0_3 = arith.constant 0 : index
    %2 = vector.load %arg1[%c0_1, %c0_2, %c0_3] : memref<2x32x128xf32, #tpu.memory_space<vmem>>, vector<1x32x128xf32>
    %3 = vector.shape_cast %2 : vector<1x32x128xf32> to vector<32x128xf32>
    %c1 = arith.constant 1 : index
    %c0_4 = arith.constant 0 : index
    %c0_5 = arith.constant 0 : index
    %4 = vector.load %arg1[%c1, %c0_4, %c0_5] : memref<2x32x128xf32, #tpu.memory_space<vmem>>, vector<1x32x128xf32>
    %5 = vector.shape_cast %4 : vector<1x32x128xf32> to vector<32x128xf32>
    %6 = arith.maximumf %3, %5 : vector<32x128xf32>
    %7 = arith.subf %3, %6 : vector<32x128xf32>
    %8 = math.exp %7 : vector<32x128xf32>
    %9 = arith.subf %5, %6 : vector<32x128xf32>
    %10 = math.exp %9 : vector<32x128xf32>
    %11 = arith.addf %8, %10 : vector<32x128xf32>
    %cst = arith.constant 2.500000e-01 : f32
    %12 = vector.broadcast %cst : f32 to vector<32x128xf32>
    %c1_i32 = arith.constant 1 : i32
    %13 = vector.broadcast %c1_i32 : i32 to vector<32x128xi32>
    %14 = arith.cmpi eq, %1, %13 : vector<32x128xi32>
    %15 = arith.select %14, %5, %3 : vector<32x128xi1>, vector<32x128xf32>
    %16 = arith.select %14, %10, %8 : vector<32x128xi1>, vector<32x128xf32>
    %cst_6 = arith.constant 7.500000e-01 : f32
    %17 = vector.broadcast %cst_6 : f32 to vector<32x128xf32>
    %18 = arith.select %14, %17, %12 : vector<32x128xi1>, vector<32x128xf32>
    %19 = arith.subf %15, %6 : vector<32x128xf32>
    %20 = math.log %11 : vector<32x128xf32>
    %21 = arith.subf %19, %20 : vector<32x128xf32>
    %22 = tpu.reciprocal %11 : vector<32x128xf32> -> vector<32x128xf32>
    %23 = arith.mulf %16, %22 : vector<32x128xf32>
    %cst_7 = arith.constant 1.000000e+00 : f32
    %24 = vector.broadcast %cst_7 : f32 to vector<32x128xf32>
    %25 = arith.subf %24, %23 : vector<32x128xf32>
    %cst_8 = arith.constant 0.000000e+00 : f32
    %26 = vector.broadcast %cst_8 : f32 to vector<32x128xf32>
    %27 = arith.maximumf %25, %26 : vector<32x128xf32>
    %28 = arith.mulf %27, %27 : vector<32x128xf32>
    %cst_9 = arith.constant 0.000000e+00 : f32
    %29 = vector.broadcast %cst_9 : f32 to vector<32x128xf32>
    %30 = arith.subf %29, %18 : vector<32x128xf32>
    %31 = arith.mulf %30, %28 : vector<32x128xf32>
    %32 = arith.mulf %31, %21 : vector<32x128xf32>
    %cst_10 = arith.constant dense<0.000000e+00> : vector<128xf32>
    %33 = vector.multi_reduction <add>, %32, %cst_10 [0] : vector<32x128xf32> to vector<128xf32>
    %34 = vector.shape_cast %33 : vector<128xf32> to vector<1x128xf32>
    %c0_11 = arith.constant 0 : index
    %c0_12 = arith.constant 0 : index
    %35 = vector.load %arg3[%c0_11, %c0_12] : memref<1x128xf32, #tpu.memory_space<vmem>>, vector<1x128xf32>
    tpu.vector_store %arg3[%c0_11, %c0_12], %34 {strides = array<i32>} : memref<1x128xf32, #tpu.memory_space<vmem>>, vector<1x128xf32>,
    return
  }
  func.func @transform_0(%arg0: i32) -> (i32, i32, i32) {
    %c0_i32 = arith.constant 0 : i32
    %c0_i32_0 = arith.constant 0 : i32
    %c0_i32_1 = arith.constant 0 : i32
    return %c0_i32, %arg0, %c0_i32_0 : i32, i32, i32
  }
  func.func @transform_1(%arg0: i32) -> (i32, i32) {
    %c0_i32 = arith.constant 0 : i32
    %c0_i32_0 = arith.constant 0 : i32
    return %arg0, %c0_i32 : i32, i32
  }
  func.func @transform_2(%arg0: i32) -> (i32, i32) {
    %c0_i32 = arith.constant 0 : i32
    %c0_i32_0 = arith.constant 0 : i32
    return %arg0, %c0_i32 : i32, i32
  }
}

</mosaic_0001>

<bundles_post_ra>
// kernel: tpu_custom_call.1
= control target key start
LH: loop header
LB: loop body
LE: loop exit
PB: predicated region body
PF: predicated region fallthrough
CT: control target
= control target key end

     0   :  { %7 = vsyncpa [#allocation3], 0  ;;  %s610_s0 = inlined_call_operand.hbm [shape: f32[2,32,128], index: 0, kind: input, shape index: {}]   ;;  %s611_s1 = inlined_call_operand.hbm [shape: s8[32,128], index: 1, kind: input, shape index: {}]   ;;  %s612_s2 = inlined_call_operand.hbm [shape: f32[1,128], index: 2, kind: output, shape index: {}]  }
   0x1   :  { %8 = vsyncpa [#allocation6], 0 }
   0x2   :  { %9 = vsyncpa [#allocation4], 0  ;;  %s14_s11 = sshll.u32 %s610_s0, 4  ;;  %s348_s12 = smov [#allocation2]   ;;  %s15_s11 = int_to_ptr.hbm [resolvable:$true] %s14_s11 }
   0x3   :  { %s16_s13 = sshll.u32 %s348_s12, 4  ;;  %s28_s16 = sshll.u32 %s611_s1, 4  ;;  %s17_s13 = int_to_ptr.vmem [resolvable:$true] %s16_s13  ;;  %s29_s16 = int_to_ptr.hbm [resolvable:$true] %s28_s16 }
   0x4   :  { %s349_s17 = smov 128   ;;  %s350_s18 = smov 8  }
   0x5   :  { %22 = dma.hbm_to_vmem [thread:$0]  %s15_s11, 1024, %s17_s13, [#allocation3], %s349_s17, %s349_s17, %s350_s18  }
   0x6   :  { %s351_s19 = smov [#allocation5]  }
   0x7   :  { %s30_s20 = sshll.u32 %s351_s19, 4  ;;  %s31_s20 = int_to_ptr.vmem [resolvable:$true] %s30_s20 }
   0x8   :  { %33 = dma.hbm_to_vmem [thread:$0]  %s29_s16, 128, %s31_s20, [#allocation6]  }
   0x9   :  { %342 = dma.done.wait [#allocation3], 1024  }
   0xa   :  { %343 = vsyncadd [#allocation3], 4294966272 }
   0xb   :  { %344 = dma.done.wait [#allocation6], 128  }
   0xc   :  { %345 = vsyncadd [#allocation6], 4294967168  ;;  %v375_v0 = vld [vmem:[#allocation2] sm:$0xff]  ;;  %v377_v1 = vld [vmem:[#allocation2 + $0x8] sm:$0xff]  ;;  %v352_v53 = vmov 0.25   ;;  %s353_s0 = smov [#allocation7]  }
   0xd   :  { %v379_v2 = vld [vmem:[#allocation2 + $0x10] sm:$0xff]  ;;  %v381_v3 = vld [vmem:[#allocation2 + $0x18] sm:$0xff]  ;;  %v383_v4 = vld [vmem:[#allocation2 + $0x20] sm:$0xff]  ;;  %s219_s1 = sshll.u32 %s353_s0, 4  ;;  %s221_s23 = sshll.u32 %s612_s2, 4  ;;  %s220_s1 = int_to_ptr.vmem [resolvable:$true] %s219_s1  ;;  %s222_s23 = int_to_ptr.hbm [resolvable:$true] %s221_s23 }
   0xe   :  { %v385_v5 = vld [vmem:[#allocation2 + $0x28] sm:$0xff]  ;;  %v387_v6 = vld [vmem:[#allocation2 + $0x30] sm:$0xff]  ;;  %v389_v7 = vld [vmem:[#allocation2 + $0x38] sm:$0xff]  ;;  %v56_v8 = vmax.f32 %v375_v0, %v383_v4 }
   0xf   :  { %v57_v9 = vmax.f32 %v377_v1, %v385_v5  ;;  %v397_v10 = vmax.f32 %v379_v2, %v387_v6  ;;  %v401_v11 = vmax.f32 %v381_v3, %v389_v7  ;;  %v42_v33 = vld [vmem:[#allocation5] sm:$0xff] }
  0x10   :  { %v60_v12 = vsub.f32 %v375_v0, %v56_v8  ;;  %v72_v13 = vsub.f32 %v383_v4, %v56_v8  ;;  %v43_v37 = vunpack.c.0.s8 %v42_v33  ;;  %v44_v38 = vunpack.c.1.s8 %v42_v33 }
  0x11   :  { %v61_v14 = vsub.f32 %v377_v1, %v57_v9  ;;  %v62_v15 = vsub.f32 %v379_v2, %v397_v10  ;;  %v63_v16 = vsub.f32 %v381_v3, %v401_v11  ;;  %v73_v17 = vsub.f32 %v385_v5, %v57_v9 }
  0x12   :  { %v64_v18 = vmul.f32 1.442695, %v60_v12  ;;  %v74_v19 = vsub.f32 %v387_v6, %v397_v10  ;;  %v75_v23 = vsub.f32 %v389_v7, %v401_v11  ;;  %v76_v24 = vmul.f32 1.442695, %v72_v13 }
  0x13   :  { %v66_v20 = vmul.f32 1.442695, %v61_v14  ;;  %v68_v21 = vmul.f32 1.442695, %v62_v15  ;;  %v70_v22 = vmul.f32 1.442695, %v63_v16  ;;  %v45_v39 = vunpack.c.2.s8 %v42_v33 }
  0x14   :  { %238 = vpow2.f32 %v64_v18  ;;  %v78_v25 = vmul.f32 1.442695, %v73_v17  ;;  %v80_v26 = vmul.f32 1.442695, %v74_v19  ;;  %v82_v27 = vmul.f32 1.442695, %v75_v23 }
  0x15   :  { %240 = vpow2.f32 %v66_v20  ;;  %v46_v41 = vunpack.c.3.s8 %v42_v33  ;;  %vm447_vm0 = vcmp.eq.s32.totalorder %v43_v37, 1  ;;  %vm451_vm1 = vcmp.eq.s32.totalorder %v44_v38, 1 }
  0x16   :  { %242 = vpow2.f32 %v68_v21  ;;  %vm455_vm2 = vcmp.eq.s32.totalorder %v45_v39, 1  ;;  %v92_v49 = vsel %vm447_vm0, %v383_v4, %v375_v0  ;;  %v93_v50 = vsel %vm451_vm1, %v385_v5, %v377_v1 }
  0x17   :  { %244 = vpow2.f32 %v70_v22  ;;  %vm460_vm3 = vcmp.eq.s32.totalorder %v46_v41, 1  ;;  %v94_v51 = vsel %vm455_vm2, %v387_v6, %v379_v2  ;;  %v483_v54 = vsel %vm447_vm0, 0.75, %v352_v53 }
  0x18   :  { %246 = vpow2.f32 %v76_v24  ;;  %v95_v52 = vsel %vm460_vm3, %v389_v7, %v381_v3  ;;  %v488_v55 = vsel %vm451_vm1, 0.75, %v352_v53  ;;  %v492_v56 = vsel %vm455_vm2, 0.75, %v352_v53 }
  0x19   :  { %248 = vpow2.f32 %v78_v25  ;;  %v496_v57 = vsel %vm460_vm3, 0.75, %v352_v53  ;;  %v499_v58 = vsub.f32 %v92_v49, %v56_v8  ;;  %v501_v59 = vsub.f32 %v93_v50, %v57_v9 }
  0x1a   :  { %v415_v28 = vpop.eup %238  ;;  %250 = vpow2.f32 %v80_v26  ;;  %v107_v6 = vsub.f32 %v95_v52, %v401_v11  ;;  %v192_v47 = vsub.f32 0.0, %v483_v54  ;;  %v194_v3 = vsub.f32 0.0, %v492_v56 }
  0x1b   :  { %v417_v29 = vpop.eup %240  ;;  %252 = vpow2.f32 %v82_v27 }
  0x1c   :  { %v419_v30 = vpop.eup %242 }
  0x1d   :  { %v421_v31 = vpop.eup %244 }
  0x1e   :  { %v423_v32 = vpop.eup %246 }
  0x1f   :  { %v425_v34 = vpop.eup %248  ;;  %v433_v40 = vadd.f32 %v423_v32, %v415_v28  ;;  %v96_v61 = vsel %vm447_vm0, %v423_v32, %v415_v28 }
  0x20   :  { %v427_v35 = vpop.eup %250  ;;  %v437_v42 = vadd.f32 %v425_v34, %v417_v29  ;;  %v97_v62 = vsel %vm451_vm1, %v425_v34, %v417_v29 }
  0x21   :  { %v429_v36 = vpop.eup %252  ;;  %v441_v43 = vadd.f32 %v427_v35, %v419_v30  ;;  %254 = vrcp.f32 %v433_v40  ;;  %v131_v60 = vand.u32 2147483648, %v433_v40  ;;  %v98_v63 = vsel %vm455_vm2, %v427_v35, %v419_v30 }
  0x22   :  { %v445_v44 = vadd.f32 %v429_v36, %v421_v31  ;;  %256 = vrcp.f32 %v437_v42  ;;  %vm125_vm4 = vweird.f32 %v433_v40  ;;  %v129_v1 = vand.u32 2147483647, %v433_v40 }
  0x23   :  { %258 = vrcp.f32 %v441_v43  ;;  %vm139_vm5 = vweird.f32 %v437_v42  ;;  %v143_v8 = vand.u32 2147483647, %v437_v42  ;;  %v145_v9 = vand.u32 2147483648, %v437_v42 }
  0x24   :  { %260 = vrcp.f32 %v445_v44  ;;  %v132_v13 = vor.u32 1.1754944e-38, %v131_v60  ;;  %vm153_vm6 = vweird.f32 %v441_v43  ;;  %v157_v15 = vand.u32 2147483647, %v441_v43 }
  0x25   :  { %262 = vlog2.f32 %v433_v40  ;;  %v159_v19 = vand.u32 2147483648, %v441_v43  ;;  %vm167_vm9 = vweird.f32 %v445_v44  ;;  %v173_v26 = vand.u32 2147483648, %v445_v44 }
  0x26   :  { %264 = vlog2.f32 %v437_v42  ;;  %v171_v39 = vand.u32 2147483647, %v445_v44  ;;  %vm130_vm13 = vcmp.eq.f32.partialorder %v129_v1, 8.507059e+37  ;;  %vm144_vm15 = vcmp.eq.f32.partialorder %v143_v8, 8.507059e+37 }
  0x27   :  { %v255_v0 = vpop.eup %254  ;;  %266 = vlog2.f32 %v441_v43  ;;  %v174_v8 = vor.u32 1.1754944e-38, %v173_v26  ;;  %v193_v35 = vsub.f32 0.0, %v488_v55 }
  0x28   :  { %v257_v4 = vpop.eup %256  ;;  %268 = vlog2.f32 %v445_v44  ;;  %v121_v5 = vmul.f32 %v255_v0, %v433_v40  ;;  %vm126_vm7 = vweird.f32 %v255_v0  ;;  %v146_v40 = vor.u32 1.1754944e-38, %v145_v9 }
  0x29   :  { %v259_v12 = vpop.eup %258  ;;  %v135_v14 = vmul.f32 %v257_v4, %v437_v42  ;;  %vm140_vm8 = vweird.f32 %v257_v4  ;;  %vm536_vm11 = vmor %vm125_vm4, %vm126_vm7 }
  0x2a   :  { %v261_v16 = vpop.eup %260  ;;  %v122_v17 = vsub.f32 1.0, %v121_v5  ;;  %v149_v18 = vmul.f32 %v259_v12, %v441_v43  ;;  %vm154_vm10 = vweird.f32 %v259_v12  ;;  %vm544_vm14 = vmor %vm139_vm5, %vm140_vm8  ;;  %vm158_vm5 = vcmp.eq.f32.partialorder %v157_v15, 8.507059e+37 }
  0x2b   :  { %v263_v20 = vpop.eup %262  ;;  %v136_v21 = vsub.f32 1.0, %v135_v14  ;;  %v163_v22 = vmul.f32 %v261_v16, %v445_v44  ;;  %vm168_vm12 = vweird.f32 %v261_v16  ;;  %vm551_vm4 = vmor %vm153_vm6, %vm154_vm10  ;;  %v160_v14 = vor.u32 1.1754944e-38, %v159_v19 }
  0x2c   :  { %v265_v23 = vpop.eup %264  ;;  %v123_v24 = vmul.f32 %v255_v0, %v122_v17  ;;  %v150_v25 = vsub.f32 1.0, %v149_v18  ;;  %vm560_vm7 = vmor %vm167_vm9, %vm168_vm12  ;;  %vm172_vm6 = vcmp.eq.f32.partialorder %v171_v39, 8.507059e+37  ;;  %v109_v45 = vmul.f32 0.6931472, %v263_v20 }
  0x2d   :  { %v267_v27 = vpop.eup %266  ;;  %v137_v37 = vmul.f32 %v257_v4, %v136_v21  ;;  %v164_v38 = vsub.f32 1.0, %v163_v22  ;;  %v195_v20 = vsub.f32 0.0, %v496_v57 }
  0x2e   :  { %v269_v41 = vpop.eup %268  ;;  %v124_v49 = vadd.f32 %v255_v0, %v123_v24  ;;  %v151_v53 = vmul.f32 %v259_v12, %v150_v25  ;;  %v113_v34 = vmul.f32 0.6931472, %v267_v27 }
  0x2f   :  { %v138_v60 = vadd.f32 %v257_v4, %v137_v37  ;;  %v165_v1 = vmul.f32 %v261_v16, %v164_v38 }
  0x30   :  { %v128_v42 = vsel %vm536_vm11, %v255_v0, %v124_v49  ;;  %v152_v17 = vadd.f32 %v259_v12, %v151_v53  ;;  %v99_v0 = vsel %vm460_vm3, %v429_v36, %v421_v31 }
  0x31   :  { %v133_v43 = vsel %vm130_vm13, %v132_v13, %v128_v42  ;;  %v142_v18 = vsel %vm544_vm14, %v257_v4, %v138_v60  ;;  %v166_v21 = vadd.f32 %v261_v16, %v165_v1  ;;  %v106_v4 = vsub.f32 %v94_v51, %v397_v10 }
  0x32   :  { %v147_v15 = vsel %vm144_vm15, %v146_v40, %v142_v18  ;;  %v156_v44 = vsel %vm551_vm4, %v259_v12, %v152_v17  ;;  %v176_v13 = vmul.f32 %v133_v43, %v96_v61  ;;  %v111_v10 = vmul.f32 0.6931472, %v265_v23 }
  0x33   :  { %v161_v19 = vsel %vm158_vm5, %v160_v14, %v156_v44  ;;  %v170_v31 = vsel %vm560_vm7, %v261_v16, %v166_v21  ;;  %v177_v36 = vmul.f32 %v147_v15, %v97_v62  ;;  %v115_v62 = vmul.f32 0.6931472, %v269_v41 }
  0x34   :  { %v175_v28 = vsel %vm172_vm6, %v174_v8, %v170_v31  ;;  %v178_v32 = vmul.f32 %v161_v19, %v98_v63  ;;  %v180_v2 = vsub.f32 1.0, %v176_v13  ;;  %v116_v63 = vsub.f32 %v499_v58, %v109_v45 }
  0x35   :  { %v179_v46 = vmul.f32 %v175_v28, %v99_v0  ;;  %v181_v29 = vsub.f32 1.0, %v177_v36  ;;  %v117_v7 = vsub.f32 %v501_v59, %v111_v10  ;;  %v118_v22 = vsub.f32 %v106_v4, %v113_v34 }
  0x36   :  { %v182_v51 = vsub.f32 1.0, %v178_v32  ;;  %v184_v61 = vmax.f32 %v180_v2, 0.0  ;;  %v119_v24 = vsub.f32 %v107_v6, %v115_v62 }
  0x37   :  { %v183_v12 = vsub.f32 1.0, %v179_v46  ;;  %v185_v30 = vmax.f32 %v181_v29, 0.0 }
  0x38   :  { %v186_v48 = vmax.f32 %v182_v51, 0.0  ;;  %v188_v16 = vmul.f32 %v184_v61, %v184_v61 }
  0x39   :  { %v187_v11 = vmax.f32 %v183_v12, 0.0  ;;  %v189_v52 = vmul.f32 %v185_v30, %v185_v30 }
  0x3a   :  { %v190_v23 = vmul.f32 %v186_v48, %v186_v48  ;;  %v196_v54 = vmul.f32 %v192_v47, %v188_v16 }
  0x3b   :  { %v191_v25 = vmul.f32 %v187_v11, %v187_v11  ;;  %v197_v26 = vmul.f32 %v193_v35, %v189_v52 }
  0x3c   :  { %v198_v27 = vmul.f32 %v194_v3, %v190_v23  ;;  %v200_v55 = vmul.f32 %v196_v54, %v116_v63 }
  0x3d   :  { %v199_v33 = vmul.f32 %v195_v20, %v191_v25  ;;  %v201_v58 = vmul.f32 %v197_v26, %v117_v7 }
  0x3e   :  { %v202_v37 = vmul.f32 %v198_v27, %v118_v22 }
  0x3f   :  { %v203_v38 = vmul.f32 %v199_v33, %v119_v24  ;;  %v204_v39 = vadd.f32 %v201_v58, %v200_v55 }
  0x41   :  { %v205_v56 = vadd.f32 %v204_v39, %v202_v37 }
  0x43   :  { %v206_v41 = vadd.f32 %v205_v56, %v203_v38 }
  0x45   :  { %v207_v59 = vrot.slane %v206_v41, 4 }
  0x47   :  { %v208_v49 = vadd.f32 %v207_v59, %v206_v41 }
  0x49   :  { %v209_v50 = vrot.slane %v208_v49, 2 }
  0x4b   :  { %v210_v40 = vadd.f32 %v209_v50, %v208_v49 }
  0x4d   :  { %v211_v57 = vrot.slane %v210_v40, 1 }
  0x4f   :  { %v212_v53 = vadd.f32 %v211_v57, %v210_v40 }
  0x51   :  { %213 = vst [vmem:[#allocation7] sm:$0x1] %v212_v53 }
  0x52   :  { %224 = dma.vmem_to_hbm [thread:$0]  %s220_s1, 16, %s222_s23, [#allocation4]  }
  0x53   :  { %346 = dma.done.wait [#allocation4], 16  }
  0x54   :  { %347 = vsyncadd [#allocation4], 4294967280 }
  0x55   :  { %229 = vsyncpa [#allocation3], 1 }
  0x56   :  { %230 = vsyncpa [#allocation6], 1 }
  0x57   :  { %231 = vsyncpa [#allocation4], 1 }

</bundles_post_ra>
